<compile_context>
chip_gen: v6e
topology: v6e:2x2x1
jax: 0.10.0
libtpu: 0.0.40
codegen_flags: <defaults>
</compile_context>

<pallas_src>
import functools

import jax
import jax.numpy as jnp
from jax.experimental import pallas as pl
from jax.experimental.pallas import tpu as pltpu


def attention_net_kernel(x_ref, p_ref, out_ref, *, num_heads, head_dim, num_classes):
    f32 = jnp.float32
    E = num_heads * head_dim
    x = x_ref[...]                                            # (S, E)
    S = x.shape[0]

    # --- fused q/k/v: one wide (E, 3E) matmul (attention scale pre-folded into q block) ---
    qkv = (jnp.dot(x, p_ref[0:E, :], preferred_element_type=f32)
           + p_ref[2 * E:2 * E + 1, :])                       # (S, 3E)
    q = qkv[:, 0:E]
    k = qkv[:, E:2 * E]
    v = qkv[:, 2 * E:3 * E]
    kT = k.T                                                  # single XLU transpose, (E, S)

    # --- per-head attention, accumulated straight through folded (out_proj @ fc1) ---
    acc = jnp.zeros((S, E), f32)
    for h in range(num_heads):                                # static unroll (num_heads small)
        lo = h * head_dim
        qh = q[:, lo:lo + head_dim]                           # (S, hd)   lane slice
        kTh = kT[lo:lo + head_dim, :]                         # (hd, S)   sublane slice
        s = jnp.dot(qh, kTh, preferred_element_type=f32)      # (S, S)
        s = s - jnp.max(s, axis=-1, keepdims=True)
        pr = jnp.exp(s)
        pr = pr * pl.reciprocal(jnp.sum(pr, axis=-1, keepdims=True), approx=False)
        oh = jnp.dot(pr, v[:, lo:lo + head_dim], preferred_element_type=f32)   # (S, hd)
        # rows E+lo : E+lo+hd, lanes 2E:3E hold the matching slice of folded (out_proj @ fc1)
        acc = acc + jnp.dot(oh, p_ref[E + lo:E + lo + head_dim, 2 * E:3 * E],
                            preferred_element_type=f32)       # (S, E)

    # --- folded (out_proj -> fc1) bias ---
    y = acc + p_ref[2 * E + 1:2 * E + 2, 0:E]

    # --- LayerNorm (biased variance, eps=1e-5); gamma/beta are folded into fc2 ---
    mu = jnp.mean(y, axis=-1, keepdims=True)
    d = y - mu
    var = jnp.mean(d * d, axis=-1, keepdims=True)
    yn = d * jax.lax.rsqrt(var + 1e-5)

    # --- fc2 (gamma-scaled, zero-padded to 2E lanes) + softmax over dim=1 (class axis) ---
    z = (jnp.dot(yn, p_ref[E:2 * E, 0:2 * E], preferred_element_type=f32)
         + p_ref[2 * E + 2:2 * E + 3, 0:2 * E])
    z = z[:, 0:num_classes]
    z = z - jnp.max(z, axis=1, keepdims=True)
    e = jnp.exp(z)
    out_ref[...] = e * pl.reciprocal(jnp.sum(e, axis=1, keepdims=True), approx=False)


def fold_params(p, *, head_dim, num_classes):
    """Wrapper-side folding + packing of all module parameters into ONE (2E+8, 3E) slab.

    Row layout (lane width L = 3E):
      rows 0:E        -> folded q/k/v weight (E, 3E)         [q|k|v along lanes]
      rows E:2E       -> [ fc2 (gamma-folded, zero-padded to 2E lanes) | out_proj@fc1 ]
      rows 2E:2E+8    -> bias rows: b_qkv (3E), b_of (E), b2' (C); rest zero padding
    """
    E = p["wq"].shape[0]
    L = 3 * E
    scale = 1.0 / float(head_dim) ** 0.5

    # Fold q/k/v transform Linears with the MHA in_proj; fold attention scale into q.
    wq_f = (p["wq"] @ p["wiq"]) * scale
    bq_f = (p["bq"] @ p["wiq"] + p["biq"]) * scale
    wk_f = p["wk"] @ p["wik"]
    bk_f = p["bk"] @ p["wik"] + p["bik"]
    wv_f = p["wv"] @ p["wiv"]
    bv_f = p["bv"] @ p["wiv"] + p["biv"]
    w_qkv = jnp.concatenate([wq_f, wk_f, wv_f], axis=1)       # (E, 3E)
    b_qkv = jnp.concatenate([bq_f, bk_f, bv_f], axis=1)       # (1, 3E)

    # Fold MHA out_proj into fc1 (chained with no nonlinearity in between).
    w_of = p["wo"] @ p["w1"]                                  # (E, E)
    b_of = p["bo"] @ p["w1"] + p["b1"]                        # (1, E)

    # Fold LayerNorm gamma/beta into fc2 (again: no nonlinearity in between).
    w2_f = p["gamma"].reshape(E, 1) * p["w2"]                 # (E, C)
    b2_f = p["beta"] @ p["w2"] + p["b2"]                      # (1, C)

    # fc2 zero-padded to 2E output lanes (lane-tile-aligned block; extra lanes stay zero
    # and are sliced off in-kernel before the final softmax).
    w2_pad = jnp.zeros((E, 2 * E), jnp.float32).at[:, :num_classes].set(w2_f)
    rows_mid = jnp.concatenate([w2_pad, w_of], axis=1)        # (E, 3E)

    def row(v):
        return jnp.zeros((1, L), jnp.float32).at[:, :v.shape[1]].set(v)

    bias_rows = jnp.concatenate(
        [row(b_qkv), row(b_of), row(b2_f), jnp.zeros((5, L), jnp.float32)], axis=0)  # (8, 3E)

    return jnp.concatenate([w_qkv, rows_mid, bias_rows], axis=0)   # (2E+8, 3E)


def attention_net_pallas(x, params, *, num_heads, head_dim):
    S, _ = x.shape
    num_classes = params["w2"].shape[1]
    p_slab = fold_params(params, head_dim=head_dim, num_classes=num_classes)
    kernel = functools.partial(
        attention_net_kernel, num_heads=num_heads, head_dim=head_dim,
        num_classes=num_classes)
    vmem = lambda: pl.BlockSpec(memory_space=pltpu.MemorySpace.VMEM)
    # TODO(synk): for batched inputs, add grid=(B,) with
    # dimension_semantics=("parallel",) and a constant-index BlockSpec for the parameter
    # slab so v7x's two TensorCores split the batch while weights stay VMEM-resident.
    return pl.pallas_call(
        kernel,
        out_shape=jax.ShapeDtypeStruct((S, num_classes), jnp.float32),
        in_specs=[vmem(), vmem()],
        out_specs=vmem(),
    )(x, p_slab)


def attention_net_ref(x, p, *, num_heads, head_dim):
    """Pure-JAX, UNFUSED reference matching the PyTorch module for validation."""
    q0 = x @ p["wq"] + p["bq"]
    k0 = x @ p["wk"] + p["bk"]
    v0 = x @ p["wv"] + p["bv"]
    q = q0 @ p["wiq"] + p["biq"]
    k = k0 @ p["wik"] + p["bik"]
    v = v0 @ p["wiv"] + p["biv"]
    S = x.shape[0]
    qh = q.reshape(S, num_heads, head_dim).transpose(1, 0, 2) / (head_dim ** 0.5)
    kh = k.reshape(S, num_heads, head_dim).transpose(1, 0, 2)
    vh = v.reshape(S, num_heads, head_dim).transpose(1, 0, 2)
    s = jnp.einsum("hqd,hkd->hqk", qh, kh)
    pr = jax.nn.softmax(s, axis=-1)
    o = jnp.einsum("hqk,hkd->hqd", pr, vh).transpose(1, 0, 2).reshape(S, -1)
    o = o @ p["wo"] + p["bo"]
    y = o @ p["w1"] + p["b1"]
    mu = jnp.mean(y, axis=-1, keepdims=True)
    var = jnp.mean((y - mu) ** 2, axis=-1, keepdims=True)
    y = (y - mu) * jax.lax.rsqrt(var + 1e-5) * p["gamma"] + p["beta"]
    z = y @ p["w2"] + p["b2"]
    return jax.nn.softmax(z, axis=1)


def make_params(key, embed_dim, num_classes):
    ks = jax.random.split(key, 20)

    def w(k, shape, scale=0.05):
        return (scale * jax.random.normal(k, shape)).astype(jnp.float32)

    E, C = embed_dim, num_classes
    return {
        # query/key/value transform Linears (E -> E), stored as (in, out)
        "wq": w(ks[0], (E, E)), "bq": w(ks[1], (1, E)),
        "wk": w(ks[2], (E, E)), "bk": w(ks[3], (1, E)),
        "wv": w(ks[4], (E, E)), "bv": w(ks[5], (1, E)),
        # MHA in_proj (3E x E split into three E->E pieces), (in, out)
        "wiq": w(ks[6], (E, E)), "biq": w(ks[7], (1, E)),
        "wik": w(ks[8], (E, E)), "bik": w(ks[9], (1, E)),
        "wiv": w(ks[10], (E, E)), "biv": w(ks[11], (1, E)),
        # MHA out_proj (E -> E)
        "wo": w(ks[12], (E, E)), "bo": w(ks[13], (1, E)),
        # fc1 (E -> E)
        "w1": w(ks[14], (E, E)), "b1": w(ks[15], (1, E)),
        # layernorm
        "gamma": jnp.ones((1, E), jnp.float32),
        "beta": jnp.zeros((1, E), jnp.float32),
        # fc2 (E -> C)
        "w2": w(ks[16], (E, C)), "b2": w(ks[17], (1, C)),
    }


if __name__ == "__main__":
    num_classes = 4       # -> num_heads = 4
    num_tokens = 4        # -> embed_dim = 4**2 * 4 = 64, head_dim = 16
    embed_dim = num_tokens ** 2 * num_classes
    num_heads = num_classes
    head_dim = embed_dim // num_heads
    seq_len = 8           # unbatched sequence length fed to nn.MultiheadAttention

    key = jax.random.PRNGKey(0)
    kx, kp = jax.random.split(key)
    x = jax.random.normal(kx, (seq_len, embed_dim), jnp.float32)
    params = make_params(kp, embed_dim, num_classes)

    out = attention_net_pallas(x, params, num_heads=num_heads, head_dim=head_dim)
    out = jax.block_until_ready(out)

    ref = attention_net_ref(x, params, num_heads=num_heads, head_dim=head_dim)
    assert out.shape == (seq_len, num_classes)
    # Wrapper-side weight folding reassociates f32 accumulation slightly; keep a
    # tight but robust tolerance.
    assert jnp.allclose(out, ref, atol=2e-5, rtol=2e-5), "mismatch vs reference"

    print("KERNEL_OK")
</pallas_src>

<mosaic_0001>
module attributes {stable_mosaic.version = 11 : i64} {
  func.func @attention_net_kernel(%arg0: memref<8x64xf32, #tpu.memory_space<vmem>>, %arg1: memref<136x192xf32, #tpu.memory_space<vmem>>, %arg2: memref<8x4xf32, #tpu.memory_space<vmem>>) attributes {dimension_semantics = [], scalar_prefetch = 0 : i64, scratch_operands = 0 : i64, tpu.core_type = #tpu.core_type<tc>} {
    %c0 = arith.constant 0 : index
    %c0_0 = arith.constant 0 : index
    %0 = vector.load %arg0[%c0, %c0_0] : memref<8x64xf32, #tpu.memory_space<vmem>>, vector<8x64xf32>
    %c0_1 = arith.constant 0 : index
    %c0_2 = arith.constant 0 : index
    %1 = vector.load %arg1[%c0_1, %c0_2] : memref<136x192xf32, #tpu.memory_space<vmem>>, vector<64x192xf32>
    %cst = arith.constant dense<0.000000e+00> : vector<8x192xf32>
    %2 = tpu.matmul %0, %1, %cst {dimension_numbers = #tpu.dot_dimension_numbers<[1], [0], [0], [1], [0, 0, 1, 1], [], []>} : vector<8x64xf32>, vector<64x192xf32>, vector<8x192xf32> -> vector<8x192xf32>
    %c128 = arith.constant 128 : index
    %c0_3 = arith.constant 0 : index
    %3 = vector.load %arg1[%c128, %c0_3] : memref<136x192xf32, #tpu.memory_space<vmem>>, vector<1x192xf32>
    %4 = vector.broadcast %3 : vector<1x192xf32> to vector<8x192xf32>
    %5 = arith.addf %2, %4 : vector<8x192xf32>
    %6 = vector.extract_strided_slice %5 {offsets = [0, 0], sizes = [8, 64], strides = [1, 1]} : vector<8x192xf32> to vector<8x64xf32>
    %7 = vector.extract_strided_slice %5 {offsets = [0, 64], sizes = [8, 64], strides = [1, 1]} : vector<8x192xf32> to vector<8x64xf32>
    %8 = vector.extract_strided_slice %5 {offsets = [0, 128], sizes = [8, 64], strides = [1, 1]} : vector<8x192xf32> to vector<8x64xf32>
    %9 = tpu.transpose %7, [1, 0] : vector<8x64xf32> -> vector<64x8xf32>
    %cst_4 = arith.constant 0.000000e+00 : f32
    %10 = vector.broadcast %cst_4 : f32 to vector<8x64xf32>
    %11 = vector.extract_strided_slice %6 {offsets = [0, 0], sizes = [8, 16], strides = [1, 1]} : vector<8x64xf32> to vector<8x16xf32>
    %12 = vector.extract_strided_slice %9 {offsets = [0, 0], sizes = [16, 8], strides = [1, 1]} : vector<64x8xf32> to vector<16x8xf32>
    %cst_5 = arith.constant dense<0.000000e+00> : vector<8x8xf32>
    %13 = tpu.matmul %11, %12, %cst_5 {dimension_numbers = #tpu.dot_dimension_numbers<[1], [0], [0], [1], [0, 0, 1, 1], [], []>} : vector<8x16xf32>, vector<16x8xf32>, vector<8x8xf32> -> vector<8x8xf32>
    %cst_6 = arith.constant dense<0xFF800000> : vector<8xf32>
    %14 = vector.multi_reduction <maximumf>, %13, %cst_6 [1] : vector<8x8xf32> to vector<8xf32>
    %15 = vector.shape_cast %14 : vector<8xf32> to vector<8x1xf32>
    %16 = vector.broadcast %15 : vector<8x1xf32> to vector<8x8xf32>
    %17 = arith.subf %13, %16 : vector<8x8xf32>
    %18 = math.exp %17 : vector<8x8xf32>
    %cst_7 = arith.constant dense<0.000000e+00> : vector<8xf32>
    %19 = vector.multi_reduction <add>, %18, %cst_7 [1] : vector<8x8xf32> to vector<8xf32>
    %20 = vector.shape_cast %19 : vector<8xf32> to vector<8x1xf32>
    %21 = tpu.reciprocal %20 : vector<8x1xf32> -> vector<8x1xf32>
    %22 = vector.broadcast %21 : vector<8x1xf32> to vector<8x8xf32>
    %23 = arith.mulf %18, %22 : vector<8x8xf32>
    %24 = vector.extract_strided_slice %8 {offsets = [0, 0], sizes = [8, 16], strides = [1, 1]} : vector<8x64xf32> to vector<8x16xf32>
    %cst_8 = arith.constant dense<0.000000e+00> : vector<8x16xf32>
    %25 = tpu.matmul %23, %24, %cst_8 {dimension_numbers = #tpu.dot_dimension_numbers<[1], [0], [0], [1], [0, 0, 1, 1], [], []>} : vector<8x8xf32>, vector<8x16xf32>, vector<8x16xf32> -> vector<8x16xf32>
    %c64 = arith.constant 64 : index
    %c128_9 = arith.constant 128 : index
    %26 = vector.load %arg1[%c64, %c128_9] : memref<136x192xf32, #tpu.memory_space<vmem>>, vector<16x64xf32>
    %cst_10 = arith.constant dense<0.000000e+00> : vector<8x64xf32>
    %27 = tpu.matmul %25, %26, %cst_10 {dimension_numbers = #tpu.dot_dimension_numbers<[1], [0], [0], [1], [0, 0, 1, 1], [], []>} : vector<8x16xf32>, vector<16x64xf32>, vector<8x64xf32> -> vector<8x64xf32>
    %28 = arith.addf %10, %27 : vector<8x64xf32>
    %29 = vector.extract_strided_slice %6 {offsets = [0, 16], sizes = [8, 16], strides = [1, 1]} : vector<8x64xf32> to vector<8x16xf32>
    %30 = vector.extract_strided_slice %9 {offsets = [16, 0], sizes = [16, 8], strides = [1, 1]} : vector<64x8xf32> to vector<16x8xf32>
    %cst_11 = arith.constant dense<0.000000e+00> : vector<8x8xf32>
    %31 = tpu.matmul %29, %30, %cst_11 {dimension_numbers = #tpu.dot_dimension_numbers<[1], [0], [0], [1], [0, 0, 1, 1], [], []>} : vector<8x16xf32>, vector<16x8xf32>, vector<8x8xf32> -> vector<8x8xf32>
    %cst_12 = arith.constant dense<0xFF800000> : vector<8xf32>
    %32 = vector.multi_reduction <maximumf>, %31, %cst_12 [1] : vector<8x8xf32> to vector<8xf32>
    %33 = vector.shape_cast %32 : vector<8xf32> to vector<8x1xf32>
    %34 = vector.broadcast %33 : vector<8x1xf32> to vector<8x8xf32>
    %35 = arith.subf %31, %34 : vector<8x8xf32>
    %36 = math.exp %35 : vector<8x8xf32>
    %cst_13 = arith.constant dense<0.000000e+00> : vector<8xf32>
    %37 = vector.multi_reduction <add>, %36, %cst_13 [1] : vector<8x8xf32> to vector<8xf32>
    %38 = vector.shape_cast %37 : vector<8xf32> to vector<8x1xf32>
    %39 = tpu.reciprocal %38 : vector<8x1xf32> -> vector<8x1xf32>
    %40 = vector.broadcast %39 : vector<8x1xf32> to vector<8x8xf32>
    %41 = arith.mulf %36, %40 : vector<8x8xf32>
    %42 = vector.extract_strided_slice %8 {offsets = [0, 16], sizes = [8, 16], strides = [1, 1]} : vector<8x64xf32> to vector<8x16xf32>
    %cst_14 = arith.constant dense<0.000000e+00> : vector<8x16xf32>
    %43 = tpu.matmul %41, %42, %cst_14 {dimension_numbers = #tpu.dot_dimension_numbers<[1], [0], [0], [1], [0, 0, 1, 1], [], []>} : vector<8x8xf32>, vector<8x16xf32>, vector<8x16xf32> -> vector<8x16xf32>
    %c80 = arith.constant 80 : index
    %c128_15 = arith.constant 128 : index
    %44 = vector.load %arg1[%c80, %c128_15] : memref<136x192xf32, #tpu.memory_space<vmem>>, vector<16x64xf32>
    %cst_16 = arith.constant dense<0.000000e+00> : vector<8x64xf32>
    %45 = tpu.matmul %43, %44, %cst_16 {dimension_numbers = #tpu.dot_dimension_numbers<[1], [0], [0], [1], [0, 0, 1, 1], [], []>} : vector<8x16xf32>, vector<16x64xf32>, vector<8x64xf32> -> vector<8x64xf32>
    %46 = arith.addf %28, %45 : vector<8x64xf32>
    %47 = vector.extract_strided_slice %6 {offsets = [0, 32], sizes = [8, 16], strides = [1, 1]} : vector<8x64xf32> to vector<8x16xf32>
    %48 = vector.extract_strided_slice %9 {offsets = [32, 0], sizes = [16, 8], strides = [1, 1]} : vector<64x8xf32> to vector<16x8xf32>
    %cst_17 = arith.constant dense<0.000000e+00> : vector<8x8xf32>
    %49 = tpu.matmul %47, %48, %cst_17 {dimension_numbers = #tpu.dot_dimension_numbers<[1], [0], [0], [1], [0, 0, 1, 1], [], []>} : vector<8x16xf32>, vector<16x8xf32>, vector<8x8xf32> -> vector<8x8xf32>
    %cst_18 = arith.constant dense<0xFF800000> : vector<8xf32>
    %50 = vector.multi_reduction <maximumf>, %49, %cst_18 [1] : vector<8x8xf32> to vector<8xf32>
    %51 = vector.shape_cast %50 : vector<8xf32> to vector<8x1xf32>
    %52 = vector.broadcast %51 : vector<8x1xf32> to vector<8x8xf32>
    %53 = arith.subf %49, %52 : vector<8x8xf32>
    %54 = math.exp %53 : vector<8x8xf32>
    %cst_19 = arith.constant dense<0.000000e+00> : vector<8xf32>
    %55 = vector.multi_reduction <add>, %54, %cst_19 [1] : vector<8x8xf32> to vector<8xf32>
    %56 = vector.shape_cast %55 : vector<8xf32> to vector<8x1xf32>
    %57 = tpu.reciprocal %56 : vector<8x1xf32> -> vector<8x1xf32>
    %58 = vector.broadcast %57 : vector<8x1xf32> to vector<8x8xf32>
    %59 = arith.mulf %54, %58 : vector<8x8xf32>
    %60 = vector.extract_strided_slice %8 {offsets = [0, 32], sizes = [8, 16], strides = [1, 1]} : vector<8x64xf32> to vector<8x16xf32>
    %cst_20 = arith.constant dense<0.000000e+00> : vector<8x16xf32>
    %61 = tpu.matmul %59, %60, %cst_20 {dimension_numbers = #tpu.dot_dimension_numbers<[1], [0], [0], [1], [0, 0, 1, 1], [], []>} : vector<8x8xf32>, vector<8x16xf32>, vector<8x16xf32> -> vector<8x16xf32>
    %c96 = arith.constant 96 : index
    %c128_21 = arith.constant 128 : index
    %62 = vector.load %arg1[%c96, %c128_21] : memref<136x192xf32, #tpu.memory_space<vmem>>, vector<16x64xf32>
    %cst_22 = arith.constant dense<0.000000e+00> : vector<8x64xf32>
    %63 = tpu.matmul %61, %62, %cst_22 {dimension_numbers = #tpu.dot_dimension_numbers<[1], [0], [0], [1], [0, 0, 1, 1], [], []>} : vector<8x16xf32>, vector<16x64xf32>, vector<8x64xf32> -> vector<8x64xf32>
    %64 = arith.addf %46, %63 : vector<8x64xf32>
    %65 = vector.extract_strided_slice %6 {offsets = [0, 48], sizes = [8, 16], strides = [1, 1]} : vector<8x64xf32> to vector<8x16xf32>
    %66 = vector.extract_strided_slice %9 {offsets = [48, 0], sizes = [16, 8], strides = [1, 1]} : vector<64x8xf32> to vector<16x8xf32>
    %cst_23 = arith.constant dense<0.000000e+00> : vector<8x8xf32>
    %67 = tpu.matmul %65, %66, %cst_23 {dimension_numbers = #tpu.dot_dimension_numbers<[1], [0], [0], [1], [0, 0, 1, 1], [], []>} : vector<8x16xf32>, vector<16x8xf32>, vector<8x8xf32> -> vector<8x8xf32>
    %cst_24 = arith.constant dense<0xFF800000> : vector<8xf32>
    %68 = vector.multi_reduction <maximumf>, %67, %cst_24 [1] : vector<8x8xf32> to vector<8xf32>
    %69 = vector.shape_cast %68 : vector<8xf32> to vector<8x1xf32>
    %70 = vector.broadcast %69 : vector<8x1xf32> to vector<8x8xf32>
    %71 = arith.subf %67, %70 : vector<8x8xf32>
    %72 = math.exp %71 : vector<8x8xf32>
    %cst_25 = arith.constant dense<0.000000e+00> : vector<8xf32>
    %73 = vector.multi_reduction <add>, %72, %cst_25 [1] : vector<8x8xf32> to vector<8xf32>
    %74 = vector.shape_cast %73 : vector<8xf32> to vector<8x1xf32>
    %75 = tpu.reciprocal %74 : vector<8x1xf32> -> vector<8x1xf32>
    %76 = vector.broadcast %75 : vector<8x1xf32> to vector<8x8xf32>
    %77 = arith.mulf %72, %76 : vector<8x8xf32>
    %78 = vector.extract_strided_slice %8 {offsets = [0, 48], sizes = [8, 16], strides = [1, 1]} : vector<8x64xf32> to vector<8x16xf32>
    %cst_26 = arith.constant dense<0.000000e+00> : vector<8x16xf32>
    %79 = tpu.matmul %77, %78, %cst_26 {dimension_numbers = #tpu.dot_dimension_numbers<[1], [0], [0], [1], [0, 0, 1, 1], [], []>} : vector<8x8xf32>, vector<8x16xf32>, vector<8x16xf32> -> vector<8x16xf32>
    %c112 = arith.constant 112 : index
    %c128_27 = arith.constant 128 : index
    %80 = vector.load %arg1[%c112, %c128_27] : memref<136x192xf32, #tpu.memory_space<vmem>>, vector<16x64xf32>
    %cst_28 = arith.constant dense<0.000000e+00> : vector<8x64xf32>
    %81 = tpu.matmul %79, %80, %cst_28 {dimension_numbers = #tpu.dot_dimension_numbers<[1], [0], [0], [1], [0, 0, 1, 1], [], []>} : vector<8x16xf32>, vector<16x64xf32>, vector<8x64xf32> -> vector<8x64xf32>
    %82 = arith.addf %64, %81 : vector<8x64xf32>
    %c129 = arith.constant 129 : index
    %c0_29 = arith.constant 0 : index
    %83 = vector.load %arg1[%c129, %c0_29] : memref<136x192xf32, #tpu.memory_space<vmem>>, vector<1x64xf32>
    %84 = vector.broadcast %83 : vector<1x64xf32> to vector<8x64xf32>
    %85 = arith.addf %82, %84 : vector<8x64xf32>
    %cst_30 = arith.constant dense<0.000000e+00> : vector<8xf32>
    %86 = vector.multi_reduction <add>, %85, %cst_30 [1] : vector<8x64xf32> to vector<8xf32>
    %87 = vector.shape_cast %86 : vector<8xf32> to vector<8x1xf32>
    %cst_31 = arith.constant 6.400000e+01 : f32
    %88 = vector.broadcast %cst_31 : f32 to vector<8x1xf32>
    %89 = arith.divf %87, %88 : vector<8x1xf32>
    %90 = vector.broadcast %89 : vector<8x1xf32> to vector<8x64xf32>
    %91 = arith.subf %85, %90 : vector<8x64xf32>
    %92 = arith.mulf %91, %91 : vector<8x64xf32>
    %cst_32 = arith.constant dense<0.000000e+00> : vector<8xf32>
    %93 = vector.multi_reduction <add>, %92, %cst_32 [1] : vector<8x64xf32> to vector<8xf32>
    %94 = vector.shape_cast %93 : vector<8xf32> to vector<8x1xf32>
    %cst_33 = arith.constant 6.400000e+01 : f32
    %95 = vector.broadcast %cst_33 : f32 to vector<8x1xf32>
    %96 = arith.divf %94, %95 : vector<8x1xf32>
    %cst_34 = arith.constant 9.99999974E-6 : f32
    %97 = vector.broadcast %cst_34 : f32 to vector<8x1xf32>
    %98 = arith.addf %96, %97 : vector<8x1xf32>
    %99 = math.rsqrt %98 : vector<8x1xf32>
    %100 = vector.broadcast %99 : vector<8x1xf32> to vector<8x64xf32>
    %101 = arith.mulf %91, %100 : vector<8x64xf32>
    %c64_35 = arith.constant 64 : index
    %c0_36 = arith.constant 0 : index
    %102 = vector.load %arg1[%c64_35, %c0_36] : memref<136x192xf32, #tpu.memory_space<vmem>>, vector<64x128xf32>
    %cst_37 = arith.constant dense<0.000000e+00> : vector<8x128xf32>
    %103 = tpu.matmul %101, %102, %cst_37 {dimension_numbers = #tpu.dot_dimension_numbers<[1], [0], [0], [1], [0, 0, 1, 1], [], []>} : vector<8x64xf32>, vector<64x128xf32>, vector<8x128xf32> -> vector<8x128xf32>
    %c130 = arith.constant 130 : index
    %c0_38 = arith.constant 0 : index
    %104 = vector.load %arg1[%c130, %c0_38] : memref<136x192xf32, #tpu.memory_space<vmem>>, vector<1x128xf32>
    %105 = vector.broadcast %104 : vector<1x128xf32> to vector<8x128xf32>
    %106 = arith.addf %103, %105 : vector<8x128xf32>
    %107 = vector.extract_strided_slice %106 {offsets = [0, 0], sizes = [8, 4], strides = [1, 1]} : vector<8x128xf32> to vector<8x4xf32>
    %cst_39 = arith.constant dense<0xFF800000> : vector<8xf32>
    %108 = vector.multi_reduction <maximumf>, %107, %cst_39 [1] : vector<8x4xf32> to vector<8xf32>
    %109 = vector.shape_cast %108 : vector<8xf32> to vector<8x1xf32>
    %110 = vector.broadcast %109 : vector<8x1xf32> to vector<8x4xf32>
    %111 = arith.subf %107, %110 : vector<8x4xf32>
    %112 = math.exp %111 : vector<8x4xf32>
    %cst_40 = arith.constant dense<0.000000e+00> : vector<8xf32>
    %113 = vector.multi_reduction <add>, %112, %cst_40 [1] : vector<8x4xf32> to vector<8xf32>
    %114 = vector.shape_cast %113 : vector<8xf32> to vector<8x1xf32>
    %115 = tpu.reciprocal %114 : vector<8x1xf32> -> vector<8x1xf32>
    %116 = vector.broadcast %115 : vector<8x1xf32> to vector<8x4xf32>
    %117 = arith.mulf %112, %116 : vector<8x4xf32>
    %c0_41 = arith.constant 0 : index
    %c0_42 = arith.constant 0 : index
    %118 = vector.load %arg2[%c0_41, %c0_42] : memref<8x4xf32, #tpu.memory_space<vmem>>, vector<8x4xf32>
    tpu.vector_store %arg2[%c0_41, %c0_42], %117 {strides = array<i32>} : memref<8x4xf32, #tpu.memory_space<vmem>>, vector<8x4xf32>,
    return
  }
}

</mosaic_0001>

<bundles_post_ra>
// kernel: tpu_custom_call.1
= control target key start
LH: loop header
LB: loop body
LE: loop exit
PB: predicated region body
PF: predicated region fallthrough
CT: control target
= control target key end

     0   :  { %7 = vsyncpa [#allocation3], 0  ;;  %s1583_s0 = inlined_call_operand.hbm [shape: f32[8,64], index: 0, kind: input, shape index: {}]   ;;  %s1584_s1 = inlined_call_operand.hbm [shape: f32[136,192], index: 1, kind: input, shape index: {}]   ;;  %s1585_s2 = inlined_call_operand.vmem [shape: f32[8,4], index: 2, kind: output, shape index: {}]  }
   0x1   :  { %8 = vsyncpa [#allocation5], 0  ;;  %s1440_s9 = smov [#allocation2]   ;;  %s1441_s11 = smov [#allocation4]  }
   0x2   :  { %s15_s10 = sshll.u32 %s1440_s9, 4  ;;  %s24_s12 = sshll.u32 %s1441_s11, 4  ;;  %s16_s10 = int_to_ptr.vmem [resolvable:$true] %s15_s10  ;;  %s25_s12 = int_to_ptr.vmem [resolvable:$true] %s24_s12 }
   0x3   :  { %s1404_s13 = scalar_lea.vmem %s16_s10, 128  ;;  %p1409_p1 = scmp.lt.s32.totalorder %s16_s10, %s16_s10 }
   0x4   :  { %p1405_p0 = scmp.ne.s32.totalorder %s16_s10, %s1404_s13  ;;  %p1410_p2 = scmp.lt.s32.totalorder %s1404_s13, %s1404_s13 }
   0x6   :  { %p1411_p3 = por %p1410_p2, %p1409_p1 }
   0x8   :  { %p1412_p4 = pnand %p1411_p3, %p1405_p0 }
   0xa   :  { %1415 = shalt.err (!%p1412_p4)
}
   0xb   :  { %18 = dma.hbm_to_vmem [thread:$0]  %s1583_s0, 128, %s16_s10, [#allocation3]  }
   0xc   :  { %s1424_s16 = scalar_lea.vmem %s25_s12, 4352  ;;  %p1429_p6 = scmp.lt.s32.totalorder %s25_s12, %s25_s12 }
   0xd   :  { %p1425_p5 = scmp.ne.s32.totalorder %s25_s12, %s1424_s16  ;;  %p1430_p7 = scmp.lt.s32.totalorder %s1424_s16, %s1424_s16 }
   0xf   :  { %p1431_p8 = por %p1430_p7, %p1429_p6 }
  0x11   :  { %p1432_p9 = pnand %p1431_p8, %p1425_p5 }
  0x13   :  { %1435 = shalt.err (!%p1432_p9)
}
  0x14   :  { %s1442_s17 = smov 256   ;;  %s1443_s18 = smov 16  }
  0x15   :  { %30 = dma.hbm_to_vmem [thread:$0]  %s1584_s1, 4352, %s25_s12, [#allocation5], %s1442_s17, %s1442_s17, %s1443_s18  }
  0x16   :  { %1436 = dma.done.wait [#allocation3], 128  }
  0x17   :  { %1437 = vsyncadd [#allocation3], 4294967168 }
  0x18   :  { %1438 = dma.done.wait [#allocation5], 4352  }
  0x19   :  { %1439 = vsyncadd [#allocation5], 4294962944  ;;  %v1444_v0 = vmov 0.0   ;;  %v53_v1 = vld [vmem:[#allocation4 + $0x78] sm:$0xff]  ;;  %v52_v2 = vld [vmem:[#allocation4 + $0x70] sm:$0xff]  ;;  %vm67_vm0 = vcmask 523264   ;;  %v57_v18 = vlaneseq }
  0x1a   :  { %135 = vmatprep.mubr.f32.mxu0 %v1444_v0  ;;  %1275 = vmatprep.subr.mxu1 %v1444_v0  ;;  %v51_v3 = vld [vmem:[#allocation4 + $0x68] sm:$0xff]  ;;  %v50_v4 = vld [vmem:[#allocation4 + $0x60] sm:$0xff]  ;;  %v49_v5 = vld [vmem:[#allocation4 + $0x58] sm:$0xff]  ;;  %vm1445_vm1 = vmmov 0   ;;  %s1446_s0 = smov 48   ;;  %s1447_s1 = smov 64  }
  0x1b   :  { %87 = vmatprep.subr.mxu0 %v53_v1  ;;  %v48_v6 = vld [vmem:[#allocation4 + $0x50] sm:$0xff]  ;;  %v47_v7 = vld [vmem:[#allocation4 + $0x48] sm:$0xff]  ;;  %v46_v8 = vld [vmem:[#allocation4 + $0x40] sm:$0xff]  ;;  %v58_v19 = vshrl.u32 %v57_v18, 7  ;;  %1277 = vmatprep.mubr.msk.f32.mxu1 %vm1445_vm1, %v1444_v0  ;;  %vm145_vm2 = vcmask 130048   ;;  %vm220_vm3 = vcmask 64512  }
  0x1c   :  { %88 = vmatpush1.msra.mxu0 %v52_v2  ;;  %v45_v9 = vld [vmem:[#allocation4 + $0x38] sm:$0xff]  ;;  %v44_v10 = vld [vmem:[#allocation4 + $0x30] sm:$0xff]  ;;  %v43_v11 = vld [vmem:[#allocation4 + $0x28] sm:$0xff]  ;;  %s1448_s21 = smov 112   ;;  %s1449_s22 = smov 96   ;;  %vm1201_vm4 = vcmask 31744  }
  0x1d   :  { %89 = vmatprep.subr.mxu0 %v51_v3  ;;  %v42_v12 = vld [vmem:[#allocation4 + $0x20] sm:$0xff]  ;;  %v41_v13 = vld [vmem:[#allocation4 + $0x18] sm:$0xff]  ;;  %v40_v14 = vld [vmem:[#allocation4 + $0x10] sm:$0xff]  ;;  %v59_v20 = vsub.s32 0, %v58_v19  ;;  %v63_v25 = vsub.s32 1, %v58_v19  ;;  %s1450_s23 = smov 32  }
  0x1e   :  { %90 = vmatpush1.msra.mxu0 %v50_v4  ;;  %v39_v15 = vld [vmem:[#allocation4 + $0x8] sm:$0xff]  ;;  %v38_v16 = vld [vmem:[#allocation4] sm:$0xff]  ;;  %v37_v17 = vld [vmem:[#allocation2] sm:$0xff]  ;;  %s1451_s24 = smov 80  }
  0x1f   :  { %91 = vmatprep.subr.mxu0 %v49_v5  ;;  %v55_v21 = vld [vmem:[#allocation4 + $0x100] ss:$8 sm:$0x3]  ;;  %v474_v57 = vld [vmem:[#allocation4 + $0xb8] sm:$0xff] }
  0x20   :  { %92 = vmatpush1.msra.mxu0 %v48_v6  ;;  %v60_v22 = vrot.slane %v55_v21, %v59_v20  ;;  %v64_v26 = vrot.slane %v55_v21, %v63_v25  ;;  %v473_v58 = vld [vmem:[#allocation4 + $0xa8] sm:$0xff]  ;;  %v306_v59 = vld [vmem:[#allocation4 + $0x98] sm:$0xff] }
  0x21   :  { %93 = vmatprep.subr.mxu0 %v47_v7  ;;  %v305_v61 = vld [vmem:[#allocation4 + $0x88] sm:$0xff] }
  0x22   :  { %94 = vmatpush1.msra.mxu0 %v46_v8 }
  0x23   :  { %95 = vmatprep.subr.mxu0 %v45_v9 }
  0x24   :  { %96 = vmatpush1.msra.mxu0 %v44_v10 }
  0x25   :  { %97 = vmatprep.subr.mxu0 %v43_v11 }
  0x26   :  { %98 = vmatpush1.msra.mxu0 %v42_v12 }
  0x27   :  { %99 = vmatprep.subr.mxu0 %v41_v13 }
  0x28   :  { %100 = vmatpush1.msra.mxu0 %v40_v14 }
  0x29   :  { %101 = vmatprep.subr.mxu0 %v39_v15 }
  0x2a   :  { %102 = vmatpush1.msra.mxu0 %v38_v16  ;;  %v787_v16 = vld [vmem:[#allocation4 + $0xd8] sm:$0xff] }
  0x2b   :  { %1220 = vmatmul.mubr.msk.f32.vlgmr.msra.gmra.mxu0 %vm67_vm0, %v37_v17  ;;  %1319 = vmatprep.subr.mxu0 %v1444_v0 }
  0x2c   :  { %1323 = vmatprep.mubr.msk.f32.mxu0 %vm1445_vm1, %v1444_v0  ;;  %1320 = vmatpush3.msra.mxu0 %v787_v16 }
  0x2d   :  { %1321 = vmatprep.subr.mxu0 %v1444_v0 }
  0xeb   :  { %v137_v23 = vpop.f32.mrf.mxu0 }
  0xec   :  { %v1482_v24 = vadd.f32 %v137_v23, %v60_v22  ;;  %v786_v22 = vld [vmem:[#allocation4 + $0xc8] sm:$0xff] }
  0xed   :  { %v139_v27 = vpop.f32.mrf.mxu0  ;;  %1322 = vmatpush3.msra.mxu0 %v786_v22 }
  0xee   :  { %309 = vrot.lane.b32.xlu1 %v1482_v24, %s1446_s0  ;;  %143 = vrot.lane.b32.xlu0 %v1482_v24, %s1447_s1  ;;  %v1488_v29 = vadd.f32 %v139_v27, %v64_v26 }
  0xef   :  { %1331 = vmatprep.subr.mxu0 %v1444_v0 }
 0x160   :  { %v144_v28 = vpop.permute.xlu0 %143  ;;  %v310_v38 = vpop.permute.xlu1 %309 }
 0x161   :  { %1276 = vmatpush3.xpose.msk.msra.mxu1 %vm145_vm2, %v144_v28 }
 0x162   :  { %1280 = vmatprep.subr.mxu1 %v1444_v0 }
 0x164   :  { %1278 = vmatmul.mubr.msk.f32.vlgmr.msra.gmra.mxu1 %vm145_vm2, %v1482_v24 }
 0x165   :  { %1281 = vmatpush3.msra.mxu1 %v1488_v29  ;;  %1282 = vmatprep.mubr.msk.f32.mxu1 %vm1445_vm1, %v1444_v0 }
 0x166   :  { %1285 = vmatprep.subr.mxu1 %v1444_v0 }
 0x224   :  { %v216_v30 = vpop.f32.mrf.mxu1 }
 0x225   :  { %v221_v31 = vsel %vm220_vm3, %v216_v30, -inf }
 0x226   :  { %222 = vmax.xlane.f32.xlu0 %v221_v31  ;;  %v1279_v32 = vpop.f32.mrf.mxu1 }
 0x2af   :  { %v223_v33 = vpop.xlane.xlu0 %222 }
 0x2b0   :  { %v224_v34 = vsub.f32 %v216_v30, %v223_v33 }
 0x2b2   :  { %v225_v35 = vmul.f32 1.442695, %v224_v34 }
 0x2b4   :  { %1374 = vpow2.f32 %v225_v35  ;;  %v1028_v35 = vld [vmem:[#allocation4 + $0xf8] sm:$0xff] }
 0x2c1   :  { %v1375_v36 = vpop.eup %1374 }
 0x2c2   :  { %v227_v37 = vsel %vm220_vm3, %v1375_v36, 0.0 }
 0x2c3   :  { %228 = vadd.xlane.f32.xlu1 %v227_v37 }
 0x2d4   :  { %307 = vrot.lane.b32.xlu1 %v1482_v24, %s1448_s21 }
 0x34c   :  { %v229_v39 = vpop.xlane.xlu1 %228 }
 0x34d   :  { %1376 = vrcp.f32 %v229_v39 }
 0x350   :  { %v308_v42 = vpop.permute.xlu1 %307 }
 0x35a   :  { %v1377_v40 = vpop.eup %1376 }
 0x35b   :  { %v231_v41 = vmul.f32 %v1377_v40, %v1375_v36  ;;  %v1027_v36 = vld [vmem:[#allocation4 + $0xe8] sm:$0xff] }
 0x35d   :  { %1283 = vmatmul.mubr.msk.f32.vlgmr.msra.gmra.mxu1 %vm220_vm3, %v231_v41 }
 0x35e   :  { %1286 = vmatpush3.xpose.msk.msra.mxu1 %vm145_vm2, %v310_v38  ;;  %1287 = vmatprep.mubr.msk.f32.mxu1 %vm1445_vm1, %v1444_v0 }
 0x35f   :  { %1290 = vmatprep.subr.mxu1 %v1444_v0 }
 0x361   :  { %1288 = vmatmul.mubr.msk.f32.vlgmr.msra.gmra.mxu1 %vm145_vm2, %v308_v42 }
 0x362   :  { %1292 = vmatprep.mubr.msk.f32.mxu1 %vm1445_vm1, %v1444_v0 }
 0x41d   :  { %v301_v43 = vpop.f32.mrf.mxu1 }
 0x41f   :  { %v1284_v44 = vpop.f32.mrf.mxu1 }
 0x421   :  { %v381_v45 = vpop.f32.mrf.mxu1 }
 0x422   :  { %v385_v46 = vsel %vm220_vm3, %v381_v45, -inf }
 0x423   :  { %386 = vmax.xlane.f32.xlu1 %v385_v46  ;;  %v1289_v47 = vpop.f32.mrf.mxu1 }
 0x434   :  { %621 = vrot.lane.b32.xlu1 %v1482_v24, %s1449_s22 }
 0x4ac   :  { %v387_v48 = vpop.xlane.xlu1 %386 }
 0x4ad   :  { %v388_v49 = vsub.f32 %v381_v45, %v387_v48  ;;  %v1103_v45 = vld [vmem:[#allocation4 + $0x101] ss:$0 sm:$0xff] }
 0x4af   :  { %v389_v50 = vmul.f32 1.442695, %v388_v49 }
 0x4b0   :  { %v622_v1 = vpop.permute.xlu1 %621 }
 0x4b1   :  { %1378 = vpow2.f32 %v389_v50 }
 0x4be   :  { %v1379_v51 = vpop.eup %1378 }
 0x4bf   :  { %v391_v52 = vsel %vm220_vm3, %v1379_v51, 0.0 }
 0x4c0   :  { %392 = vadd.xlane.f32.xlu0 %v391_v52 }
 0x4d6   :  { %397 = vrot.lane.b32.xlu0 %v1488_v29, %s1448_s21 }
 0x4da   :  { %623 = vrot.lane.b32.xlu0 %v1482_v24, %s1450_s23 }
 0x549   :  { %v393_v53 = vpop.xlane.xlu0 %392 }
 0x54a   :  { %1380 = vrcp.f32 %v393_v53 }
 0x54d   :  { %v398_v54 = vpop.permute.xlu0 %397 }
 0x54e   :  { %1291 = vmatpush3.msra.mxu1 %v398_v54 }
 0x54f   :  { %1295 = vmatprep.subr.mxu1 %v1444_v0 }
 0x551   :  { %v624_v63 = vpop.permute.xlu0 %623 }
 0x557   :  { %v1381_v55 = vpop.eup %1380 }
 0x558   :  { %v395_v56 = vmul.f32 %v1381_v55, %v1379_v51  ;;  %v1126_v55 = vld [vmem:[#allocation4 + $0xf0] sm:$0xff] }
 0x55a   :  { %1293 = vmatmul.mubr.msk.f32.vlgmr.msra.gmra.mxu1 %vm220_vm3, %v395_v56  ;;  %v1125_v56 = vld [vmem:[#allocation4 + $0xe0] sm:$0xff] }
 0x55b   :  { %1296 = vmatpush3.msra.mxu1 %v474_v57  ;;  %1299 = vmatprep.mubr.msk.f32.mxu1 %vm1445_vm1, %v1444_v0  ;;  %v1124_v57 = vld [vmem:[#allocation4 + $0xd0] sm:$0xff] }
 0x55c   :  { %1297 = vmatprep.subr.mxu1 %v1444_v0 }
 0x55d   :  { %1298 = vmatpush3.msra.mxu1 %v473_v58  ;;  %v1123_v58 = vld [vmem:[#allocation4 + $0xc0] sm:$0xff] }
 0x55e   :  { %1302 = vmatprep.subr.mxu1 %v1444_v0 }
 0x61a   :  { %v469_v60 = vpop.f32.mrf.mxu1 }
 0x61b   :  { %1300 = vmatmul.mubr.msk.f32.vlgmr.msra.gmra.mxu1 %vm145_vm2, %v469_v60  ;;  %v1121_v60 = vld [vmem:[#allocation4 + $0xa0] sm:$0xff] }
 0x61c   :  { %1303 = vmatpush3.msra.mxu1 %v306_v59  ;;  %v1294_v62 = vpop.f32.mrf.mxu1  ;;  %1306 = vmatprep.mubr.msk.f32.mxu1 %vm1445_vm1, %v1444_v0  ;;  %v1122_v59 = vld [vmem:[#allocation4 + $0xb0] sm:$0xff] }
 0x61d   :  { %1304 = vmatprep.subr.mxu1 %v1444_v0  ;;  %v1119_v62 = vld [vmem:[#allocation4 + $0x80] sm:$0xff] }
 0x61e   :  { %1305 = vmatpush3.msra.mxu1 %v305_v61  ;;  %v1120_v61 = vld [vmem:[#allocation4 + $0x90] sm:$0xff] }
 0x61f   :  { %1309 = vmatprep.subr.mxu1 %v1444_v0  ;;  %1307 = vmatmul.mubr.msk.f32.vlgmr.msra.gmra.mxu1 %vm145_vm2, %v301_v43 }
 0x620   :  { %1310 = vmatpush3.xpose.msk.msra.mxu1 %vm145_vm2, %v624_v63  ;;  %1311 = vmatprep.mubr.msk.f32.mxu1 %vm1445_vm1, %v1444_v0 }
 0x621   :  { %1314 = vmatprep.subr.mxu1 %v1444_v0 }
 0x623   :  { %1312 = vmatmul.mubr.msk.f32.vlgmr.msra.gmra.mxu1 %vm145_vm2, %v622_v1 }
 0x624   :  { %1316 = vmatprep.mubr.msk.f32.mxu1 %vm1445_vm1, %v1444_v0 }
 0x6db   :  { %v544_v2 = vpop.f32.mrf.mxu1 }
 0x6dd   :  { %v1301_v3 = vpop.f32.mrf.mxu1 }
 0x6df   :  { %v617_v4 = vpop.f32.mrf.mxu1 }
 0x6e0   :  { %v1532_v5 = vadd.f32 %v617_v4, %v544_v2 }
 0x6e1   :  { %v1308_v6 = vpop.f32.mrf.mxu1 }
 0x6e3   :  { %v695_v7 = vpop.f32.mrf.mxu1 }
 0x6e4   :  { %v699_v8 = vsel %vm220_vm3, %v695_v7, -inf }
 0x6e5   :  { %700 = vmax.xlane.f32.xlu0 %v699_v8  ;;  %v1313_v9 = vpop.f32.mrf.mxu1 }
 0x6fb   :  { %710 = vrot.lane.b32.xlu0 %v1488_v29, %s1449_s22 }
 0x6ff   :  { %862 = vrot.lane.b32.xlu0 %v1482_v24, %s1451_s24 }
 0x76e   :  { %v701_v10 = vpop.xlane.xlu0 %700 }
 0x76f   :  { %v702_v11 = vsub.f32 %v695_v7, %v701_v10 }
 0x771   :  { %v703_v12 = vmul.f32 1.442695, %v702_v11 }
 0x772   :  { %v711_v13 = vpop.permute.xlu0 %710 }
 0x773   :  { %1382 = vpow2.f32 %v703_v12  ;;  %1315 = vmatpush3.msra.mxu1 %v711_v13 }
 0x774   :  { %1326 = vmatprep.subr.mxu1 %v1444_v0 }
 0x776   :  { %v863_v21 = vpop.permute.xlu0 %862 }
 0x780   :  { %v1383_v14 = vpop.eup %1382 }
 0x781   :  { %v705_v15 = vsel %vm220_vm3, %v1383_v14, 0.0 }
 0x782   :  { %706 = vadd.xlane.f32.xlu1 %v705_v15 }
 0x793   :  { %864 = vrot.lane.b32.xlu1 %v1482_v24, %s1443_s18 }
 0x80b   :  { %v707_v17 = vpop.xlane.xlu1 %706 }
 0x80c   :  { %1384 = vrcp.f32 %v707_v17 }
 0x80f   :  { %v865_v20 = vpop.permute.xlu1 %864 }
 0x819   :  { %v1385_v18 = vpop.eup %1384 }
 0x81a   :  { %v709_v19 = vmul.f32 %v1385_v18, %v1383_v14 }
 0x81c   :  { %1317 = vmatmul.mubr.msk.f32.vlgmr.msra.gmra.mxu1 %vm220_vm3, %v709_v19 }
 0x81d   :  { %1327 = vmatpush3.xpose.msk.msra.mxu1 %vm145_vm2, %v865_v20  ;;  %1328 = vmatprep.mubr.msk.f32.mxu1 %vm1445_vm1, %v1444_v0 }
 0x81e   :  { %1336 = vmatprep.subr.mxu1 %v1444_v0 }
 0x820   :  { %1329 = vmatmul.mubr.msk.f32.vlgmr.msra.gmra.mxu1 %vm145_vm2, %v863_v21 }
 0x821   :  { %1340 = vmatprep.mubr.msk.f32.mxu1 %vm1445_vm1, %v1444_v0  ;;  %1337 = vmatpush3.msra.mxu1 %v1028_v35 }
 0x822   :  { %1338 = vmatprep.subr.mxu1 %v1444_v0 }
 0x823   :  { %1339 = vmatpush3.msra.mxu1 %v1027_v36 }
 0x8dc   :  { %v782_v23 = vpop.f32.mrf.mxu1 }
 0x8dd   :  { %1324 = vmatmul.mubr.msk.f32.vlgmr.msra.gmra.mxu0 %vm145_vm2, %v782_v23 }
 0x8de   :  { %v1318_v24 = vpop.f32.mrf.mxu1  ;;  %1333 = vmatprep.mubr.msk.f32.mxu0 %vm1445_vm1, %v1444_v0 }
 0x8e0   :  { %v936_v25 = vpop.f32.mrf.mxu1 }
 0x8e1   :  { %v940_v26 = vsel %vm220_vm3, %v936_v25, -inf }
 0x8e2   :  { %941 = vmax.xlane.f32.xlu0 %v940_v26  ;;  %v1330_v27 = vpop.f32.mrf.mxu1 }
 0x8f8   :  { %951 = vrot.lane.b32.xlu0 %v1488_v29, %s1451_s24 }
 0x96b   :  { %v942_v28 = vpop.xlane.xlu0 %941 }
 0x96c   :  { %v943_v30 = vsub.f32 %v936_v25, %v942_v28 }
 0x96e   :  { %v944_v31 = vmul.f32 1.442695, %v943_v30 }
 0x96f   :  { %v952_v32 = vpop.permute.xlu0 %951 }
 0x970   :  { %1386 = vpow2.f32 %v944_v31  ;;  %1332 = vmatpush3.msra.mxu0 %v952_v32 }
 0x971   :  { %1343 = vmatprep.subr.mxu0 %v1444_v0 }
 0x97d   :  { %v1387_v33 = vpop.eup %1386 }
 0x97e   :  { %v946_v34 = vsel %vm220_vm3, %v1387_v33, 0.0 }
 0x97f   :  { %947 = vadd.xlane.f32.xlu1 %v946_v34 }
 0x99d   :  { %v857_v37 = vpop.f32.mrf.mxu0 }
 0x99e   :  { %v861_v29 = vadd.f32 %v857_v37, %v1532_v5  ;;  %v1127_v5 = vld [vmem:[#allocation4 + $0x102] ss:$0 sm:$0xff] }
 0x99f   :  { %v1325_v38 = vpop.f32.mrf.mxu0 }
 0xa08   :  { %v948_v39 = vpop.xlane.xlu1 %947 }
 0xa09   :  { %1388 = vrcp.f32 %v948_v39 }
 0xa16   :  { %v1389_v40 = vpop.eup %1388 }
 0xa17   :  { %v950_v41 = vmul.f32 %v1389_v40, %v1387_v33 }
 0xa19   :  { %1334 = vmatmul.mubr.msk.f32.vlgmr.msra.gmra.mxu0 %vm220_vm3, %v950_v41 }
 0xa1a   :  { %1359 = vmatprep.mubr.msk.f32.mxu0 %vm1445_vm1, %v1444_v0  ;;  %1344 = vmatpush3.msra.mxu0 %v1126_v55 }
 0xa1b   :  { %1345 = vmatprep.subr.mxu0 %v1444_v0 }
 0xa1c   :  { %1346 = vmatpush3.msra.mxu0 %v1125_v56 }
 0xa1d   :  { %1347 = vmatprep.subr.mxu0 %v1444_v0 }
 0xa1e   :  { %1348 = vmatpush3.msra.mxu0 %v1124_v57 }
 0xa1f   :  { %1349 = vmatprep.subr.mxu0 %v1444_v0 }
 0xa20   :  { %1350 = vmatpush3.msra.mxu0 %v1123_v58 }
 0xa21   :  { %1351 = vmatprep.subr.mxu0 %v1444_v0 }
 0xa22   :  { %1352 = vmatpush3.msra.mxu0 %v1122_v59 }
 0xa23   :  { %1353 = vmatprep.subr.mxu0 %v1444_v0 }
 0xa24   :  { %1354 = vmatpush3.msra.mxu0 %v1121_v60 }
 0xa25   :  { %1355 = vmatprep.subr.mxu0 %v1444_v0 }
 0xa26   :  { %1356 = vmatpush3.msra.mxu0 %v1120_v61 }
 0xa27   :  { %1357 = vmatprep.subr.mxu0 %v1444_v0 }
 0xa28   :  { %1358 = vmatpush3.msra.mxu0 %v1119_v62 }
 0xad9   :  { %v1023_v42 = vpop.f32.mrf.mxu0 }
 0xada   :  { %1341 = vmatmul.mubr.msk.f32.vlgmr.msra.gmra.mxu1 %vm145_vm2, %v1023_v42 }
 0xadb   :  { %v1335_v43 = vpop.f32.mrf.mxu0 }
 0xb9a   :  { %v1098_v44 = vpop.f32.mrf.mxu1 }
 0xb9b   :  { %v1102_v46 = vadd.f32 %v1098_v44, %v861_v29 }
 0xb9c   :  { %v1342_v47 = vpop.f32.mrf.mxu1 }
 0xb9d   :  { %v1104_v48 = vadd.f32 %v1103_v45, %v1102_v46 }
 0xb9f   :  { %v1105_v49 = vsel %vm67_vm0, %v1104_v48, 0.0 }
 0xba0   :  { %1106 = vadd.xlane.f32.xlu1 %v1105_v49 }
 0xc29   :  { %v1107_v50 = vpop.xlane.xlu1 %1106 }
 0xc2a   :  { %v1109_v51 = vmul.f32 0.015625, %v1107_v50 }
 0xc2c   :  { %v1110_v52 = vsub.f32 %v1104_v48, %v1109_v51 }
 0xc2e   :  { %v1111_v53 = vmul.f32 %v1110_v52, %v1110_v52 }
 0xc30   :  { %v1112_v54 = vsel %vm67_vm0, %v1111_v53, 0.0 }
 0xc31   :  { %1113 = vadd.xlane.f32.xlu1 %v1112_v54 }
 0xcba   :  { %v1114_v63 = vpop.xlane.xlu1 %1113 }
 0xcbb   :  { %v1115_v1 = vmul.f32 0.015625, %v1114_v63 }
 0xcbd   :  { %v1116_v2 = vadd.f32 1e-05, %v1115_v1 }
 0xcbf   :  { %1390 = vrsqrt.f32 %v1116_v2 }
 0xccc   :  { %v1391_v3 = vpop.eup %1390 }
 0xccd   :  { %v1118_v4 = vmul.f32 %v1391_v3, %v1110_v52 }
 0xccf   :  { %1360 = vmatmul.mubr.msk.f32.vlgmr.msra.gmra.mxu0 %vm67_vm0, %v1118_v4 }
 0xd8f   :  { %v1197_v6 = vpop.f32.mrf.mxu0 }
 0xd90   :  { %v1198_v7 = vadd.f32 %v1197_v6, %v1127_v5 }
 0xd91   :  { %v1361_v8 = vpop.f32.mrf.mxu0 }
 0xd92   :  { %v1202_v9 = vsel %vm1201_vm4, %v1198_v7, -inf }
 0xd93   :  { %1203 = vmax.xlane.f32.xlu0 %v1202_v9 }
 0xe1c   :  { %v1204_v10 = vpop.xlane.xlu0 %1203 }
 0xe1d   :  { %v1205_v11 = vsub.f32 %v1198_v7, %v1204_v10 }
 0xe1f   :  { %v1206_v0 = vmul.f32 1.442695, %v1205_v11 }
 0xe21   :  { %1392 = vpow2.f32 %v1206_v0 }
 0xe2e   :  { %v1393_v12 = vpop.eup %1392 }
 0xe2f   :  { %v1208_v13 = vsel %vm1201_vm4, %v1393_v12, 0.0 }
 0xe30   :  { %1209 = vadd.xlane.f32.xlu1 %v1208_v13 }
 0xeb9   :  { %v1210_v14 = vpop.xlane.xlu1 %1209 }
 0xeba   :  { %1394 = vrcp.f32 %v1210_v14 }
 0xec7   :  { %v1395_v15 = vpop.eup %1394 }
 0xec8   :  { %v1212_v16 = vmul.f32 %v1395_v15, %v1393_v12 }
 0xeca   :  { %1213 = vst.msk [vmem:[%s1585_s2] sm:$0xff] %vm1201_vm4, %v1212_v16 }
 0xecb   :  { %1218 = vsyncpa [#allocation3], 1 }
 0xecc   :  { %1219 = vsyncpa [#allocation5], 1 }

</bundles_post_ra>
